<compile_context>
chip_gen: v5e
topology: v5e:2x2
jax: 0.10.0
libtpu: 0.0.40
codegen_flags: <defaults>
</compile_context>

<pallas_src>
import functools

import jax
import jax.numpy as jnp
from jax.experimental import pallas as pl
from jax.experimental.pallas import tpu as pltpu


def _spl_kernel(a_ref, b_ref, p_ref, t_ref, mse_ref, crps_ref, *,
                weights_mse, thresholds):
    """One grid step: a (TB, H8, GW) block of lane-packed images."""
    TB, H8, GW = p_ref.shape
    A = a_ref[...]                        # (H8, H8) banded row-pass matrix (1/ch folded in)
    Bm = b_ref[...]                       # (GW, GW) block-diag col-pass matrix (1/cw folded in)
    p = p_ref[...]                        # (TB, H8, GW)
    t = t_ref[...]

    # Broadcast A once per invocation for the batched row pass (flash-attn PV form).
    A_b = jnp.broadcast_to(A[None], (TB, H8, H8))

    def running_mean(x):
        # Row pass on the MXU: per-image left-multiply by the banded matrix.
        rows = jnp.einsum('bij,bjc->bic', A_b, x,
                          preferred_element_type=jnp.float32)     # (TB, H8, GW)
        # Column pass on the MXU: right-multiply by the block-diagonal banded
        # matrix.  The reshape is free (H8 % 8 == 0 and GW is lane-aligned).
        flat = rows.reshape(TB * H8, GW)
        mean = jnp.dot(flat, Bm, preferred_element_type=jnp.float32)
        return mean.reshape(TB, H8, GW)

    p_mean = running_mean(p)
    t_mean = running_mean(t)

    # Deterministic CRPS == MAE of the disturbance fields.  Padded rows / lanes /
    # images are all-zero and have zero means, so they contribute exactly zero.
    crps_elem = jnp.abs((p - p_mean) - (t - t_mean))

    # WeightedMSE: per-pixel weight chosen by target thresholds (padded entries
    # contribute zero because diff == 0 there).
    w = jnp.full(t.shape, weights_mse[0], dtype=jnp.float32)
    for i, thr in enumerate(thresholds):
        wi = weights_mse[min(i + 1, len(weights_mse) - 1)]
        w = jnp.where(t >= thr, jnp.float32(wi), w)
    diff = p - t
    mse_elem = w * diff * diff

    # Fold the major (batch) axis with plain VPU adds, then one cross-lane tree
    # reduce per (large) block; partial sums are summed outside the kernel.
    mse_ref[0] = jnp.sum(jnp.sum(mse_elem, axis=0), keepdims=True)
    crps_ref[0] = jnp.sum(jnp.sum(crps_elem, axis=0), keepdims=True)


def spl_loss(prediction, target, *, weights_mse, thresholds_mse,
             window_size=9, weights_sp=(1e-4, 1.0)):
    assert window_size % 2 == 1, "only the odd-window path is implemented"
    N, C, H, W = prediction.shape
    B = N * C
    pad = window_size // 2
    f32 = jnp.float32

    # ---- layout parameters ---------------------------------------------------
    # Pack G whole images along lanes so the packed width GW is exactly 128 (or W
    # itself when W >= 128).  Sublane axis padded to a multiple of 8.
    if W < 128:
        G = 128 // W
        GW = 128
    else:
        G = 1
        GW = W
    LW = G * W
    H8 = -(-H // 8) * 8

    # Block sizing from *padded* shapes.  ~2 MiB per input block keeps
    # 2 inputs x 2 pipeline buffers + matmul temporaries + the banded matrices
    # well inside a 32 MiB scoped-VMEM budget (safe on v7x's 64 MiB physical).
    # TODO(synk): on v5e/v6e (128 MiB VMEM) a 4-8 MiB block target amortizes the
    # per-step overhead a little better.
    row_bytes = H8 * GW * 4
    blk_target_bytes = 2 * 1024 * 1024
    rows_needed = -(-B // G)
    TB = max(1, min(rows_needed, blk_target_bytes // row_bytes, 128))
    if rows_needed >= 2:
        # Keep >= 2 grid steps so the single "parallel" axis can be sharded
        # across both v7x TensorCores.
        TB = min(TB, -(-rows_needed // 2))
    num_blocks = -(-rows_needed // TB)
    R = num_blocks * TB                    # packed rows incl. padding
    B_pad = R * G                          # images incl. zero-image padding

    # ---- host-side lane packing (no spatial padding any more) -----------------
    # TODO(synk): this one remaining transpose could also be moved into the
    # kernel; it is a single fused pad+transpose pass under jit.
    def pack(x):
        x = x.reshape(B, H, W).astype(f32)
        x = jnp.pad(x, ((0, B_pad - B), (0, H8 - H), (0, 0)))
        x = x.reshape(R, G, H8, W).transpose(0, 2, 1, 3).reshape(R, H8, LW)
        if GW > LW:
            x = jnp.pad(x, ((0, 0), (0, 0), (0, GW - LW)))
        return x

    pred_pk = pack(prediction)
    targ_pk = pack(target)

    # ---- banded filter matrices (edge clipping + normalization folded in) -----
    ri = jnp.arange(H8)
    ch = jnp.maximum(jnp.minimum(ri + pad, H - 1)
                     - jnp.maximum(ri - pad, 0) + 1, 1).astype(f32)
    rvalid = ri < H
    A = jnp.where((jnp.abs(ri[:, None] - ri[None, :]) <= pad)
                  & rvalid[:, None] & rvalid[None, :],
                  (1.0 / ch)[:, None], 0.0).astype(f32)            # (H8, H8)

    ci = jnp.arange(GW)
    img = ci // W
    col = ci % W
    lvalid = ci < LW
    cw = jnp.maximum(jnp.minimum(col + pad, W - 1)
                     - jnp.maximum(col - pad, 0) + 1, 1).astype(f32)
    Bm = jnp.where((jnp.abs(col[:, None] - col[None, :]) <= pad)
                   & (img[:, None] == img[None, :])
                   & lvalid[:, None] & lvalid[None, :],
                   (1.0 / cw)[None, :], 0.0).astype(f32)            # (GW, GW)

    kernel = functools.partial(
        _spl_kernel,
        weights_mse=tuple(float(x) for x in weights_mse),
        thresholds=tuple(float(x) for x in thresholds_mse))

    mse_part, crps_part = pl.pallas_call(
        kernel,
        out_shape=(jax.ShapeDtypeStruct((num_blocks, 1, 1), f32),
                   jax.ShapeDtypeStruct((num_blocks, 1, 1), f32)),
        grid=(num_blocks,),
        in_specs=[
            pl.BlockSpec((H8, H8), lambda b: (0, 0)),            # row-pass matrix (fetched once)
            pl.BlockSpec((GW, GW), lambda b: (0, 0)),            # col-pass matrix (fetched once)
            pl.BlockSpec((TB, H8, GW), lambda b: (b, 0, 0)),     # packed prediction
            pl.BlockSpec((TB, H8, GW), lambda b: (b, 0, 0)),     # packed target
        ],
        out_specs=(
            pl.BlockSpec((1, 1, 1), lambda b: (b, 0, 0)),        # per-block MSE sum
            pl.BlockSpec((1, 1, 1), lambda b: (b, 0, 0)),        # per-block CRPS sum
        ),
        compiler_params=pltpu.CompilerParams(
            dimension_semantics=("parallel",),                   # v7x: both TCs
            vmem_limit_bytes=32 * 1024 * 1024),
    )(A, Bm, pred_pk, targ_pk)

    # Tiny epilogue: sum per-block partials (padding contributes exactly zero)
    # and normalize by the true element count.
    inv_numel = 1.0 / float(B * H * W)
    mse = jnp.sum(mse_part) * inv_numel
    crps = jnp.sum(crps_part) * inv_numel
    return float(weights_sp[0]) * mse + float(weights_sp[1]) * crps


# ---------------- pure-JAX reference (for a self-consistency check) ----------
def _running_mean_ref(x, window_size):
    pad = window_size // 2
    B, H, W = x.shape
    xp = jnp.pad(x, ((0, 0), (pad, pad), (pad, pad)))
    s = jnp.zeros((B, H, W), x.dtype)
    for i in range(window_size):
        for j in range(window_size):
            s = s + xp[:, i:i + H, j:j + W]
    ch = (jnp.minimum(jnp.arange(H) + pad, H - 1)
          - jnp.maximum(jnp.arange(H) - pad, 0) + 1).astype(x.dtype)
    cw = (jnp.minimum(jnp.arange(W) + pad, W - 1)
          - jnp.maximum(jnp.arange(W) - pad, 0) + 1).astype(x.dtype)
    return s / (ch[:, None] * cw[None, :])


def spl_ref(prediction, target, weights_mse, thresholds_mse, window_size,
            weights_sp):
    N, C, H, W = prediction.shape
    p = prediction.reshape(-1, H, W).astype(jnp.float32)
    t = target.reshape(-1, H, W).astype(jnp.float32)
    pd = p - _running_mean_ref(p, window_size)
    td = t - _running_mean_ref(t, window_size)
    w = jnp.full_like(t, weights_mse[0])
    for i, thr in enumerate(thresholds_mse):
        w = jnp.where(t >= thr, weights_mse[min(i + 1, len(weights_mse) - 1)], w)
    mse = jnp.mean(w * (p - t) ** 2)
    crps = jnp.mean(jnp.abs(pd - td))
    return weights_sp[0] * mse + weights_sp[1] * crps


if __name__ == "__main__":
    key = jax.random.PRNGKey(0)
    k1, k2 = jax.random.split(key)
    prediction = jax.random.normal(k1, (2, 4, 16, 16), dtype=jnp.float32)
    target = jax.random.normal(k2, (2, 4, 16, 16), dtype=jnp.float32) + 1.0

    weights_mse = [1.0, 2.0, 5.0]     # deterministic in-script "parameters"
    thresholds_mse = [0.5, 2.0]
    weights_sp = (1e-4, 1.0)

    loss_fn = jax.jit(functools.partial(
        spl_loss, weights_mse=weights_mse, thresholds_mse=thresholds_mse,
        window_size=9, weights_sp=weights_sp))
    loss = jax.block_until_ready(loss_fn(prediction, target))

    ref = spl_ref(prediction, target, weights_mse, thresholds_mse, 9, weights_sp)
    # Tolerance covers possible reduced-precision MXU passes in the box-filter
    # matmuls; any structural/packing bug would be orders of magnitude larger.
    assert jnp.allclose(loss, ref, rtol=5e-3, atol=1e-4), (loss, ref)
    print("KERNEL_OK")
</pallas_src>

<mosaic_0001>
module attributes {stable_mosaic.version = 11 : i64} {
  func.func @_spl_kernel(%arg0: i32, %arg1: memref<16x16xf32, #tpu.memory_space<vmem>>, %arg2: memref<128x128xf32, #tpu.memory_space<vmem>>, %arg3: memref<1x16x128xf32, #tpu.memory_space<vmem>>, %arg4: memref<1x16x128xf32, #tpu.memory_space<vmem>>, %arg5: memref<1x1x1xf32, #tpu.memory_space<vmem>>, %arg6: memref<1x1x1xf32, #tpu.memory_space<vmem>>) attributes {dimension_semantics = [#tpu.dimension_semantics<parallel>], iteration_bounds = array<i64: 1>, scalar_prefetch = 0 : i64, scratch_operands = 0 : i64, tpu.core_type = #tpu.core_type<tc>, window_params = [{pipeline_mode = #tpu.pipeline_mode<synchronous>, transform_indices = @transform_0, window_bounds = array<i64: 16, 16>}, {pipeline_mode = #tpu.pipeline_mode<synchronous>, transform_indices = @transform_1, window_bounds = array<i64: 128, 128>}, {transform_indices = @transform_2, window_bounds = array<i64: 1, 16, 128>}, {transform_indices = @transform_3, window_bounds = array<i64: 1, 16, 128>}, {transform_indices = @transform_4, window_bounds = array<i64: 1, 1, 1>}, {transform_indices = @transform_5, window_bounds = array<i64: 1, 1, 1>}]} {
    %c0 = arith.constant 0 : index
    %c0_0 = arith.constant 0 : index
    %0 = vector.load %arg1[%c0, %c0_0] : memref<16x16xf32, #tpu.memory_space<vmem>>, vector<16x16xf32>
    %c0_1 = arith.constant 0 : index
    %c0_2 = arith.constant 0 : index
    %1 = vector.load %arg2[%c0_1, %c0_2] : memref<128x128xf32, #tpu.memory_space<vmem>>, vector<128x128xf32>
    %c0_3 = arith.constant 0 : index
    %c0_4 = arith.constant 0 : index
    %c0_5 = arith.constant 0 : index
    %2 = vector.load %arg3[%c0_3, %c0_4, %c0_5] : memref<1x16x128xf32, #tpu.memory_space<vmem>>, vector<1x16x128xf32>
    %c0_6 = arith.constant 0 : index
    %c0_7 = arith.constant 0 : index
    %c0_8 = arith.constant 0 : index
    %3 = vector.load %arg4[%c0_6, %c0_7, %c0_8] : memref<1x16x128xf32, #tpu.memory_space<vmem>>, vector<1x16x128xf32>
    %4 = vector.shape_cast %0 : vector<16x16xf32> to vector<1x16x16xf32>
    "tpu.trace_start"() <{level = 10 : i32, message = "bij,bjc->bic"}> : () -> ()
    %cst = arith.constant dense<0.000000e+00> : vector<1x16x128xf32>
    %5 = tpu.matmul %4, %2, %cst {dimension_numbers = #tpu.dot_dimension_numbers<[2], [1], [1], [2], [0, 0, 0, 1, 1, 2], [0], [0]>} : vector<1x16x16xf32>, vector<1x16x128xf32>, vector<1x16x128xf32> -> vector<1x16x128xf32>
    "tpu.trace_stop"() : () -> ()
    %6 = vector.shape_cast %5 : vector<1x16x128xf32> to vector<16x128xf32>
    %cst_9 = arith.constant dense<0.000000e+00> : vector<16x128xf32>
    %7 = tpu.matmul %6, %1, %cst_9 {dimension_numbers = #tpu.dot_dimension_numbers<[1], [0], [0], [1], [0, 0, 1, 1], [], []>} : vector<16x128xf32>, vector<128x128xf32>, vector<16x128xf32> -> vector<16x128xf32>
    %8 = vector.shape_cast %7 : vector<16x128xf32> to vector<1x16x128xf32>
    "tpu.trace_start"() <{level = 10 : i32, message = "bij,bjc->bic"}> : () -> ()
    %cst_10 = arith.constant dense<0.000000e+00> : vector<1x16x128xf32>
    %9 = tpu.matmul %4, %3, %cst_10 {dimension_numbers = #tpu.dot_dimension_numbers<[2], [1], [1], [2], [0, 0, 0, 1, 1, 2], [0], [0]>} : vector<1x16x16xf32>, vector<1x16x128xf32>, vector<1x16x128xf32> -> vector<1x16x128xf32>
    "tpu.trace_stop"() : () -> ()
    %10 = vector.shape_cast %9 : vector<1x16x128xf32> to vector<16x128xf32>
    %cst_11 = arith.constant dense<0.000000e+00> : vector<16x128xf32>
    %11 = tpu.matmul %10, %1, %cst_11 {dimension_numbers = #tpu.dot_dimension_numbers<[1], [0], [0], [1], [0, 0, 1, 1], [], []>} : vector<16x128xf32>, vector<128x128xf32>, vector<16x128xf32> -> vector<16x128xf32>
    %12 = vector.shape_cast %11 : vector<16x128xf32> to vector<1x16x128xf32>
    %13 = arith.subf %2, %8 : vector<1x16x128xf32>
    %14 = arith.subf %3, %12 : vector<1x16x128xf32>
    %15 = arith.subf %13, %14 : vector<1x16x128xf32>
    %16 = math.absf %15 : vector<1x16x128xf32>
    %cst_12 = arith.constant 1.000000e+00 : f32
    %17 = vector.broadcast %cst_12 : f32 to vector<1x16x128xf32>
    %cst_13 = arith.constant 5.000000e-01 : f32
    %18 = vector.broadcast %cst_13 : f32 to vector<1x16x128xf32>
    %19 = arith.cmpf oge, %3, %18 : vector<1x16x128xf32>
    %cst_14 = arith.constant 2.000000e+00 : f32
    %20 = vector.broadcast %cst_14 : f32 to vector<1x16x128xf32>
    %21 = arith.select %19, %20, %17 : vector<1x16x128xi1>, vector<1x16x128xf32>
    %cst_15 = arith.constant 2.000000e+00 : f32
    %22 = vector.broadcast %cst_15 : f32 to vector<1x16x128xf32>
    %23 = arith.cmpf oge, %3, %22 : vector<1x16x128xf32>
    %cst_16 = arith.constant 5.000000e+00 : f32
    %24 = vector.broadcast %cst_16 : f32 to vector<1x16x128xf32>
    %25 = arith.select %23, %24, %21 : vector<1x16x128xi1>, vector<1x16x128xf32>
    %26 = arith.subf %2, %3 : vector<1x16x128xf32>
    %27 = arith.mulf %25, %26 : vector<1x16x128xf32>
    %28 = arith.mulf %27, %26 : vector<1x16x128xf32>
    %cst_17 = arith.constant dense<0.000000e+00> : vector<16x128xf32>
    %29 = vector.multi_reduction <add>, %28, %cst_17 [0] : vector<1x16x128xf32> to vector<16x128xf32>
    %30 = vector.shape_cast %29 : vector<16x128xf32> to vector<1x16x128xf32>
    %cst_18 = arith.constant dense<0.000000e+00> : vector<1xf32>
    %31 = vector.multi_reduction <add>, %30, %cst_18 [1, 2] : vector<1x16x128xf32> to vector<1xf32>
    %32 = vector.shape_cast %31 : vector<1xf32> to vector<1x1x1xf32>
    %33 = vector.extract %32[0, 0, 0] : f32 from vector<1x1x1xf32>
    %34 = vector.broadcast %33 : f32 to vector<1x1xf32>
    %c0_19 = arith.constant 0 : index
    %c0_20 = arith.constant 0 : index
    %c0_21 = arith.constant 0 : index
    %35 = vector.load %arg5[%c0_19, %c0_20, %c0_21] : memref<1x1x1xf32, #tpu.memory_space<vmem>>, vector<1x1x1xf32>
    %36 = vector.shape_cast %35 : vector<1x1x1xf32> to vector<1x1xf32>
    %37 = vector.shape_cast %34 : vector<1x1xf32> to vector<1x1x1xf32>
    tpu.vector_store %arg5[%c0_19, %c0_20, %c0_21], %37 {strides = array<i32>} : memref<1x1x1xf32, #tpu.memory_space<vmem>>, vector<1x1x1xf32>,
    %cst_22 = arith.constant dense<0.000000e+00> : vector<16x128xf32>
    %38 = vector.multi_reduction <add>, %16, %cst_22 [0] : vector<1x16x128xf32> to vector<16x128xf32>
    %39 = vector.shape_cast %38 : vector<16x128xf32> to vector<1x16x128xf32>
    %cst_23 = arith.constant dense<0.000000e+00> : vector<1xf32>
    %40 = vector.multi_reduction <add>, %39, %cst_23 [1, 2] : vector<1x16x128xf32> to vector<1xf32>
    %41 = vector.shape_cast %40 : vector<1xf32> to vector<1x1x1xf32>
    %42 = vector.extract %41[0, 0, 0] : f32 from vector<1x1x1xf32>
    %43 = vector.broadcast %42 : f32 to vector<1x1xf32>
    %c0_24 = arith.constant 0 : index
    %c0_25 = arith.constant 0 : index
    %c0_26 = arith.constant 0 : index
    %44 = vector.load %arg6[%c0_24, %c0_25, %c0_26] : memref<1x1x1xf32, #tpu.memory_space<vmem>>, vector<1x1x1xf32>
    %45 = vector.shape_cast %44 : vector<1x1x1xf32> to vector<1x1xf32>
    %46 = vector.shape_cast %43 : vector<1x1xf32> to vector<1x1x1xf32>
    tpu.vector_store %arg6[%c0_24, %c0_25, %c0_26], %46 {strides = array<i32>} : memref<1x1x1xf32, #tpu.memory_space<vmem>>, vector<1x1x1xf32>,
    return
  }
  func.func @transform_0(%arg0: i32) -> (i32, i32) {
    %c0_i32 = arith.constant 0 : i32
    %c0_i32_0 = arith.constant 0 : i32
    %c0_i32_1 = arith.constant 0 : i32
    return %c0_i32, %c0_i32_0 : i32, i32
  }
  func.func @transform_1(%arg0: i32) -> (i32, i32) {
    %c0_i32 = arith.constant 0 : i32
    %c0_i32_0 = arith.constant 0 : i32
    %c0_i32_1 = arith.constant 0 : i32
    return %c0_i32, %c0_i32_0 : i32, i32
  }
  func.func @transform_2(%arg0: i32) -> (i32, i32, i32) {
    %c0_i32 = arith.constant 0 : i32
    %c0_i32_0 = arith.constant 0 : i32
    %c0_i32_1 = arith.constant 0 : i32
    return %arg0, %c0_i32, %c0_i32_0 : i32, i32, i32
  }
  func.func @transform_3(%arg0: i32) -> (i32, i32, i32) {
    %c0_i32 = arith.constant 0 : i32
    %c0_i32_0 = arith.constant 0 : i32
    %c0_i32_1 = arith.constant 0 : i32
    return %arg0, %c0_i32, %c0_i32_0 : i32, i32, i32
  }
  func.func @transform_4(%arg0: i32) -> (i32, i32, i32) {
    %c0_i32 = arith.constant 0 : i32
    %c0_i32_0 = arith.constant 0 : i32
    %c0_i32_1 = arith.constant 0 : i32
    return %arg0, %c0_i32, %c0_i32_0 : i32, i32, i32
  }
  func.func @transform_5(%arg0: i32) -> (i32, i32, i32) {
    %c0_i32 = arith.constant 0 : i32
    %c0_i32_0 = arith.constant 0 : i32
    %c0_i32_1 = arith.constant 0 : i32
    return %arg0, %c0_i32, %c0_i32_0 : i32, i32, i32
  }
}

</mosaic_0001>

<bundles_post_ra>
// kernel: spl_loss.1
= control target key start
LH: loop header
LB: loop body
LE: loop exit
PB: predicated region body
PF: predicated region fallthrough
CT: control target
= control target key end

     0   :  { %11 = vsyncpa [#allocation3], 0  ;;  %vm43_vm0 = vcmask 130048   ;;  %s453_s0 = inlined_call_operand.vmem [shape: f32[16,16], index: 0, kind: input, shape index: {}]   ;;  %s454_s1 = inlined_call_operand.vmem [shape: f32[128,128], index: 1, kind: input, shape index: {}]   ;;  %s455_s2 = inlined_call_operand.vmem [shape: f32[1,16,128], index: 2, kind: input, shape index: {}]   ;;  %s456_s3 = inlined_call_operand.vmem [shape: f32[1,16,128], index: 3, kind: input, shape index: {}]   ;;  %s457_s4 = inlined_call_operand.hbm [shape: f32[1,1,1], index: 4, kind: output, shape index: {0}]   ;;  %s458_s5 = inlined_call_operand.hbm [shape: f32[1,1,1], index: 5, kind: output, shape index: {1}]  }
   0x1   :  { %v356_v0 = vld [vmem:[%s456_s3 + $0x8] sm:$0xff]  ;;  %v361_v1 = vld [vmem:[%s456_s3] sm:$0xff]  ;;  %v38_v5 = vld [vmem:[%s454_s1 + $0x78] sm:$0xff] }
   0x2   :  { %110 = vmatpush.msra.mxu2 %v356_v0  ;;  %v21_v2 = vld [vmem:[%s453_s0] sm:$0xff]  ;;  %v370_v3 = vld [vmem:[%s455_s2 + $0x8] sm:$0xff]  ;;  %245 = vmatpush.msra.mxu3 %v38_v5  ;;  %v37_v6 = vld [vmem:[%s454_s1 + $0x70] sm:$0xff] }
   0x3   :  { %v375_v4 = vld [vmem:[%s455_s2] sm:$0xff]  ;;  %64 = vmatpush.msra.mxu0 %v370_v3  ;;  %v36_v7 = vld [vmem:[%s454_s1 + $0x68] sm:$0xff]  ;;  %229 = vmatpush.msra.mxu1 %v38_v5 }
   0x4   :  { %111 = vmatpush.msra.mxu2 %v361_v1  ;;  %246 = vmatpush.msra.mxu3 %v37_v6 }
   0x5   :  { %227 = vmatmul.msk.f32.vlgmr.msra.gmra.mxu2 %vm43_vm0, %v21_v2  ;;  %65 = vmatpush.msra.mxu0 %v375_v4 }
   0x6   :  { %225 = vmatmul.msk.f32.vlgmr.msra.gmra.mxu0 %vm43_vm0, %v21_v2  ;;  %119 = vmatpush.msrb.mxu2 %v38_v5 }
   0x7   :  { %73 = vmatpush.msrb.mxu0 %v38_v5 }
   0x8   :  { %120 = vmatpush.msrb.mxu2 %v37_v6 }
   0x9   :  { %12 = vsyncpa [#allocation5], 0  ;;  %v35_v8 = vld [vmem:[%s454_s1 + $0x60] sm:$0xff]  ;;  %74 = vmatpush.msrb.mxu0 %v37_v6  ;;  %247 = vmatpush.msra.mxu3 %v36_v7  ;;  %v22_v9 = vld [vmem:[%s453_s0 + $0x8] sm:$0xff]  ;;  %vm150_vm1 = vcmp.ge.f32.partialorder %v361_v1, 0.5  ;;  %vm151_vm2 = vcmp.ge.f32.partialorder %v356_v0, 0.5  ;;  %v158_v31 = vsub.f32 %v375_v4, %v361_v1  ;;  %v159_v32 = vsub.f32 %v370_v3, %v356_v0 }
   0xa   :  { %121 = vmatpush.msrb.mxu2 %v36_v7  ;;  %230 = vmatpush.msra.mxu1 %v37_v6  ;;  %v34_v10 = vld [vmem:[%s454_s1 + $0x58] sm:$0xff]  ;;  %v33_v11 = vld [vmem:[%s454_s1 + $0x50] sm:$0xff]  ;;  %v32_v12 = vld [vmem:[%s454_s1 + $0x48] sm:$0xff]  ;;  %v320_v26 = vmov 1.0   ;;  %vm154_vm3 = vcmp.ge.f32.partialorder %v361_v1, 2.0  ;;  %vm155_vm4 = vcmp.ge.f32.partialorder %v356_v0, 2.0 }
   0xb   :  { %75 = vmatpush.msrb.mxu0 %v36_v7  ;;  %248 = vmatpush.msra.mxu3 %v35_v8  ;;  %v31_v13 = vld [vmem:[%s454_s1 + $0x40] sm:$0xff]  ;;  %v30_v14 = vld [vmem:[%s454_s1 + $0x38] sm:$0xff]  ;;  %v29_v15 = vld [vmem:[%s454_s1 + $0x30] sm:$0xff]  ;;  %v152_v27 = vsel %vm150_vm1, 2.0, %v320_v26  ;;  %v153_v28 = vsel %vm151_vm2, 2.0, %v320_v26  ;;  %s200_s10 = sshll.u32 %s457_s4, 4  ;;  %s201_s10 = int_to_ptr.hbm [resolvable:$true] %s200_s10 }
   0xc   :  { %122 = vmatpush.msrb.mxu2 %v35_v8  ;;  %231 = vmatpush.msra.mxu1 %v36_v7  ;;  %v28_v16 = vld [vmem:[%s454_s1 + $0x28] sm:$0xff]  ;;  %v27_v17 = vld [vmem:[%s454_s1 + $0x20] sm:$0xff]  ;;  %v26_v18 = vld [vmem:[%s454_s1 + $0x18] sm:$0xff]  ;;  %v156_v29 = vsel %vm154_vm3, 5.0, %v152_v27  ;;  %v157_v30 = vsel %vm155_vm4, 5.0, %v153_v28  ;;  %vm177_vm5 = vcmask 0  }
   0xd   :  { %228 = vmatmul.msk.f32.gmra.mxu2 %vm43_vm0, %v22_v9  ;;  %76 = vmatpush.msrb.mxu0 %v35_v8  ;;  %v25_v19 = vld [vmem:[%s454_s1 + $0x10] sm:$0xff]  ;;  %v24_v20 = vld [vmem:[%s454_s1 + $0x8] sm:$0xff]  ;;  %v23_v21 = vld [vmem:[%s454_s1] sm:$0xff]  ;;  %v160_v33 = vmul.f32 %v158_v31, %v156_v29  ;;  %v161_v34 = vmul.f32 %v159_v32, %v157_v30  ;;  %s321_s1 = smov [#allocation2]   ;;  %s322_s12 = smov [#allocation4]  }
   0xe   :  { %226 = vmatmul.msk.f32.gmra.mxu0 %vm43_vm0, %v22_v9  ;;  %123 = vmatpush.msrb.mxu2 %v34_v10  ;;  %s198_s7 = sshll.u32 %s321_s1, 4  ;;  %s209_s13 = sshll.u32 %s322_s12, 4  ;;  %s199_s7 = int_to_ptr.vmem [resolvable:$true] %s198_s7  ;;  %s210_s13 = int_to_ptr.vmem [resolvable:$true] %s209_s13 }
   0xf   :  { %77 = vmatpush.msrb.mxu0 %v34_v10  ;;  %249 = vmatpush.msra.mxu3 %v34_v10  ;;  %v162_v35 = vmul.f32 %v160_v33, %v158_v31  ;;  %v163_v36 = vmul.f32 %v161_v34, %v159_v32  ;;  %s211_s15 = sshll.u32 %s458_s5, 4  ;;  %s212_s15 = int_to_ptr.hbm [resolvable:$true] %s211_s15 }
  0x10   :  { %124 = vmatpush.msrb.mxu2 %v33_v11  ;;  %232 = vmatpush.msra.mxu1 %v35_v8 }
  0x11   :  { %78 = vmatpush.msrb.mxu0 %v33_v11  ;;  %250 = vmatpush.msra.mxu3 %v33_v11  ;;  %v166_v37 = vadd.f32 %v163_v36, %v162_v35 }
  0x12   :  { %125 = vmatpush.msrb.mxu2 %v32_v12  ;;  %233 = vmatpush.msra.mxu1 %v34_v10 }
  0x13   :  { %79 = vmatpush.msrb.mxu0 %v32_v12  ;;  %251 = vmatpush.msra.mxu3 %v32_v12 }
  0x14   :  { %126 = vmatpush.msrb.mxu2 %v31_v13  ;;  %234 = vmatpush.msra.mxu1 %v33_v11 }
  0x15   :  { %80 = vmatpush.msrb.mxu0 %v31_v13  ;;  %252 = vmatpush.msra.mxu3 %v31_v13 }
  0x16   :  { %127 = vmatpush.msrb.mxu2 %v30_v14  ;;  %235 = vmatpush.msra.mxu1 %v32_v12 }
  0x17   :  { %81 = vmatpush.msrb.mxu0 %v30_v14  ;;  %253 = vmatpush.msra.mxu3 %v30_v14 }
  0x18   :  { %128 = vmatpush.msrb.mxu2 %v29_v15  ;;  %236 = vmatpush.msra.mxu1 %v31_v13 }
  0x19   :  { %82 = vmatpush.msrb.mxu0 %v29_v15  ;;  %254 = vmatpush.msra.mxu3 %v29_v15 }
  0x1a   :  { %129 = vmatpush.msrb.mxu2 %v28_v16  ;;  %237 = vmatpush.msra.mxu1 %v30_v14 }
  0x1b   :  { %83 = vmatpush.msrb.mxu0 %v28_v16  ;;  %255 = vmatpush.msra.mxu3 %v28_v16 }
  0x1c   :  { %130 = vmatpush.msrb.mxu2 %v27_v17  ;;  %238 = vmatpush.msra.mxu1 %v29_v15 }
  0x1d   :  { %84 = vmatpush.msrb.mxu0 %v27_v17  ;;  %256 = vmatpush.msra.mxu3 %v27_v17 }
  0x1e   :  { %131 = vmatpush.msrb.mxu2 %v26_v18  ;;  %239 = vmatpush.msra.mxu1 %v28_v16 }
  0x1f   :  { %85 = vmatpush.msrb.mxu0 %v26_v18  ;;  %257 = vmatpush.msra.mxu3 %v26_v18 }
  0x20   :  { %132 = vmatpush.msrb.mxu2 %v25_v19  ;;  %240 = vmatpush.msra.mxu1 %v27_v17 }
  0x21   :  { %86 = vmatpush.msrb.mxu0 %v25_v19  ;;  %258 = vmatpush.msra.mxu3 %v25_v19 }
  0x22   :  { %133 = vmatpush.msrb.mxu2 %v24_v20  ;;  %241 = vmatpush.msra.mxu1 %v26_v18 }
  0x23   :  { %87 = vmatpush.msrb.mxu0 %v24_v20  ;;  %259 = vmatpush.msra.mxu3 %v24_v20 }
  0x24   :  { %242 = vmatpush.msra.mxu1 %v25_v19  ;;  %134 = vmatpush.msrb.mxu2 %v23_v21 }
  0x25   :  { %88 = vmatpush.msrb.mxu0 %v23_v21  ;;  %260 = vmatpush.msra.mxu3 %v23_v21 }
  0x26   :  { %243 = vmatpush.msra.mxu1 %v24_v20  ;;  %167 = vadd.xlane.f32.xlu0 %v166_v37 }
  0x28   :  { %244 = vmatpush.msra.mxu1 %v23_v21 }
  0x83   :  { %v67_v22 = vpop.f32.mrf.mxu0 }
  0x84   :  { %89 = vmatmul.f32.vlgmr.msrb.gmra.mxu0 %v67_v22 }
  0x88   :  { %v113_v23 = vpop.f32.mrf.mxu2 }
  0x89   :  { %135 = vmatmul.f32.vlgmr.msrb.gmra.mxu2 %v113_v23 }
  0x8b   :  { %v70_v24 = vpop.f32.mrf.mxu0 }
  0x8c   :  { %92 = vmatmul.f32.vlgmr.msra.gmra.mxu1 %v70_v24 }
  0x90   :  { %v116_v25 = vpop.f32.mrf.mxu2 }
  0x91   :  { %138 = vmatmul.f32.vlgmr.msra.gmra.mxu3 %v116_v25 }
  0x99   :  { %v168_v51 = vpop.xlane.xlu0 %167 }
  0x9a   :  { %v169_v52 = vrot.slane %v168_v51, 4 }
  0x9c   :  { %v170_v53 = vadd.f32 %v169_v52, %v168_v51 }
  0x9e   :  { %v171_v54 = vrot.slane %v170_v53, 2 }
  0xa0   :  { %v172_v55 = vadd.f32 %v171_v54, %v170_v53 }
  0xa2   :  { %v173_v56 = vrot.slane %v172_v55, 1 }
  0xa4   :  { %v174_v57 = vadd.f32 %v173_v56, %v172_v55 }
  0xa6   :  { %261 = vpush %v174_v57 }
  0xd7   :  { %s262_s11 = spop %261 }
 0x101   :  { %v90_v38 = vpop.f32.mrf.mxu0 }
 0x102   :  { %v142_v41 = vsub.f32 %v375_v4, %v90_v38 }
 0x109   :  { %v93_v40 = vpop.f32.mrf.mxu1 }
 0x10a   :  { %v143_v43 = vsub.f32 %v370_v3, %v93_v40 }
 0x10c   :  { %v136_v39 = vpop.f32.mrf.mxu2 }
 0x10d   :  { %v144_v42 = vsub.f32 %v361_v1, %v136_v39  ;;  %v176_v1 = vstv %s262_s11 }
 0x10e   :  { %178 = vst.msk [vmem:[#allocation2] sm:$0x1] %vm177_vm5, %v176_v1 }
 0x10f   :  { %v146_v45 = vsub.f32 %v142_v41, %v144_v42  ;;  %203 = dma.vmem_to_hbm [thread:$0]  %s199_s7, 16, %s201_s10, [#allocation3]  }
 0x111   :  { %v148_v48 = vand.u32 2147483647, %v146_v45 }
 0x114   :  { %v139_v44 = vpop.f32.mrf.mxu3 }
 0x115   :  { %v145_v46 = vsub.f32 %v356_v0, %v139_v44 }
 0x117   :  { %v147_v47 = vsub.f32 %v143_v43, %v145_v46 }
 0x119   :  { %v149_v49 = vand.u32 2147483647, %v147_v47 }
 0x11b   :  { %v181_v50 = vadd.f32 %v149_v49, %v148_v48 }
 0x11d   :  { %182 = vadd.xlane.f32.xlu0 %v181_v50 }
 0x190   :  { %v183_v58 = vpop.xlane.xlu0 %182 }
 0x191   :  { %v184_v59 = vrot.slane %v183_v58, 4 }
 0x193   :  { %v185_v60 = vadd.f32 %v184_v59, %v183_v58 }
 0x195   :  { %v186_v61 = vrot.slane %v185_v60, 2 }
 0x197   :  { %v187_v62 = vadd.f32 %v186_v61, %v185_v60 }
 0x199   :  { %v188_v63 = vrot.slane %v187_v62, 1 }
 0x19b   :  { %v189_v0 = vadd.f32 %v188_v63, %v187_v62 }
 0x19d   :  { %263 = vpush %v189_v0 }
 0x1ce   :  { %s264_s16 = spop %263 }
 0x1cf   :  { %v191_v2 = vstv %s264_s16 }
 0x1d0   :  { %192 = vst.msk [vmem:[#allocation4] sm:$0x1] %vm177_vm5, %v191_v2 }
 0x1d1   :  { %214 = dma.vmem_to_hbm [thread:$0]  %s210_s13, 16, %s212_s15, [#allocation5]  }
 0x1d2   :  { %316 = dma.done.wait [#allocation3], 16  }
 0x1d3   :  { %317 = vsyncadd [#allocation3], 4294967280 }
 0x1d4   :  { %318 = dma.done.wait [#allocation5], 16  }
 0x1d5   :  { %319 = vsyncadd [#allocation5], 4294967280 }
 0x1d6   :  { %223 = vsyncpa [#allocation3], 1 }
 0x1d7   :  { %224 = vsyncpa [#allocation5], 1 }

</bundles_post_ra>
